<compile_context>
chip_gen: v7x
topology: tpu7x:2x2x1
jax: 0.10.0
libtpu: 0.0.40
codegen_flags: <defaults>
</compile_context>

<pallas_src>
import functools

import jax
import jax.numpy as jnp
from jax.experimental import pallas as pl
from jax.experimental.pallas import tpu as pltpu


_LANE = 1024  # lane-dense last dim (multiple of 128) -> unmasked full-width stores


def _exp_act_kernel(x_ref, o_ref, *, compute_dtype):
    # out = max(exp(x) - 1, 0); exp goes to the EUP slot, rest is VPU filler.
    x = x_ref[...].astype(compute_dtype)
    o_ref[...] = jnp.maximum(jnp.exp(x) - 1.0, 0.0).astype(o_ref.dtype)


def _device_kind() -> str:
    try:
        return jax.devices()[0].device_kind.lower()
    except Exception:
        return ""


def _round_up(x: int, m: int) -> int:
    return ((x + m - 1) // m) * m


def exponential_activation(x: jax.Array) -> jax.Array:
    """Elementwise max(0, exp(x) - 1), matching ExponentialActivation.forward."""
    orig_shape = x.shape
    dtype = x.dtype
    total = x.size
    itemsize = jnp.dtype(dtype).itemsize

    # dtype sublane packing: f32 -> 8, bf16/f16 -> 16, 8-bit -> 32 sublanes.
    sublane_mult = max(8, 32 // max(itemsize, 1))
    min_block = sublane_mult * _LANE

    # Tiny-input fast path: XLA fuses the elementwise chain fine on its own;
    # a custom-call launch + tile padding would dominate here.
    if total <= 2 * min_block:
        return jnp.maximum(jnp.exp(x) - 1.0, 0.0).astype(dtype)

    # Best-effort per-generation tuning (conservative defaults if unknown).
    kind = _device_kind()
    bf16_native = ("v6" in kind) or ("v7" in kind)   # bf16-capable VPU/EUP
    num_tc = 2 if "v7" in kind else 1                 # TensorCores per chip
    target_block_bytes = (8 << 20) if (("v6" in kind) or ("v7" in kind)) else (4 << 20)

    if dtype == jnp.bfloat16 and bf16_native:
        compute_dtype = jnp.bfloat16
    else:
        compute_dtype = jnp.float32

    x_flat = x.reshape(-1)
    padded_total = total
    if total % _LANE != 0:
        # Rare fallback: pad to tile granularity. Zero padding is benign
        # (exp(0) - 1 = 0 -> clamped to 0, sliced off below).
        padded_total = _round_up(total, min_block)
        x_flat = jnp.pad(x_flat, (0, padded_total - total))
    rows = padded_total // _LANE
    x2d = x_flat.reshape(rows, _LANE)

    # Block rows: multiple of the sublane packing, targeting ~4/8 MiB blocks.
    target_rows = max(sublane_mult, (target_block_bytes // itemsize) // _LANE)
    target_rows = _round_up(target_rows, sublane_mult)

    # v7x: both TCs share the "parallel" grid axis -> want >= 4 steps (2 per
    # core) so each core still double-buffers its DMAs.  Single-TC chips keep
    # the biggest block that fits.
    if num_tc == 2 and rows >= 4 * sublane_mult:
        target_rows = min(target_rows, _round_up(pl.cdiv(rows, 4), sublane_mult))

    # Cap at the full row extent (full-dim block is always legal, no masking).
    block_rows = rows if target_rows >= rows else target_rows
    num_steps = pl.cdiv(rows, block_rows)
    block_bytes = block_rows * _LANE * itemsize

    out2d = pl.pallas_call(
        functools.partial(_exp_act_kernel, compute_dtype=compute_dtype),
        out_shape=jax.ShapeDtypeStruct((rows, _LANE), dtype),
        grid=(num_steps,),
        in_specs=[pl.BlockSpec((block_rows, _LANE), lambda i: (i, 0))],
        out_specs=pl.BlockSpec((block_rows, _LANE), lambda i: (i, 0)),
        compiler_params=pltpu.CompilerParams(
            dimension_semantics=("parallel",),
            # in + out, double-buffered, plus headroom:
            #   >= v5e's 16 MiB scoped default; ~34 MiB for 8 MiB blocks on
            #   v6e/v7x; capped well under v7x's 64 MiB physical VMEM.
            vmem_limit_bytes=int(min(max(4 * block_bytes + (2 << 20), 16 << 20), 60 << 20)),
        ),
    )(x2d)

    out_flat = out2d.reshape(-1)
    if padded_total != total:
        out_flat = out_flat[:total]
    return out_flat.reshape(orig_shape)


if __name__ == "__main__":
    key = jax.random.PRNGKey(0)
    k1, k2, k3 = jax.random.split(key, 3)

    # Module-scale input (batch=2, channels=4, spatial=16x16): tiny fast path.
    x_small = jax.random.normal(k1, (2, 4, 16, 16), dtype=jnp.float32)
    # Larger lane-aligned input: exercises the Pallas tiled path (no pad/slice).
    x_big = jax.random.normal(k2, (2, 4, 64, 64), dtype=jnp.float32)
    # Non-lane-aligned input: exercises the rare padded fallback path.
    x_odd = jax.random.normal(k3, (3, 5, 37, 41), dtype=jnp.float32)

    for xin in (x_small, x_big, x_odd):
        out = jax.block_until_ready(exponential_activation(xin))
        ref = jnp.maximum(jnp.zeros_like(xin), jnp.exp(xin) - 1.0)
        assert out.shape == xin.shape and out.dtype == xin.dtype
        assert jnp.allclose(out, ref, atol=1e-6, rtol=1e-6)

    print("KERNEL_OK")
</pallas_src>

<mosaic_0001>
module attributes {stable_mosaic.version = 11 : i64} {
  func.func @_exp_act_kernel(%arg0: i32, %arg1: memref<32x1024xf32, #tpu.memory_space<vmem>>, %arg2: memref<32x1024xf32, #tpu.memory_space<vmem>>) attributes {dimension_semantics = [#tpu.dimension_semantics<parallel>], iteration_bounds = array<i64: 1>, scalar_prefetch = 0 : i64, scratch_operands = 0 : i64, tpu.core_type = #tpu.core_type<tc>, window_params = [{transform_indices = @transform_0, window_bounds = array<i64: 32, 1024>}, {transform_indices = @transform_1, window_bounds = array<i64: 32, 1024>}]} {
    %c0 = arith.constant 0 : index
    %c0_0 = arith.constant 0 : index
    %0 = vector.load %arg1[%c0, %c0_0] : memref<32x1024xf32, #tpu.memory_space<vmem>>, vector<32x1024xf32>
    %1 = math.exp %0 : vector<32x1024xf32>
    %cst = arith.constant 1.000000e+00 : f32
    %2 = vector.broadcast %cst : f32 to vector<32x1024xf32>
    %3 = arith.subf %1, %2 : vector<32x1024xf32>
    %cst_1 = arith.constant 0.000000e+00 : f32
    %4 = vector.broadcast %cst_1 : f32 to vector<32x1024xf32>
    %5 = arith.maximumf %3, %4 : vector<32x1024xf32>
    %c0_2 = arith.constant 0 : index
    %c0_3 = arith.constant 0 : index
    %6 = vector.load %arg2[%c0_2, %c0_3] : memref<32x1024xf32, #tpu.memory_space<vmem>>, vector<32x1024xf32>
    tpu.vector_store %arg2[%c0_2, %c0_3], %5 {strides = array<i32>} : memref<32x1024xf32, #tpu.memory_space<vmem>>, vector<32x1024xf32>,
    return
  }
  func.func @transform_0(%arg0: i32) -> (i32, i32) {
    %c0_i32 = arith.constant 0 : i32
    %c0_i32_0 = arith.constant 0 : i32
    return %arg0, %c0_i32 : i32, i32
  }
  func.func @transform_1(%arg0: i32) -> (i32, i32) {
    %c0_i32 = arith.constant 0 : i32
    %c0_i32_0 = arith.constant 0 : i32
    return %arg0, %c0_i32 : i32, i32
  }
}

</mosaic_0001>

<bundles_post_ra>
// kernel: tpu_custom_call.1
= control target key start
LH: loop header
LB: loop body
LE: loop exit
PB: predicated region body
PF: predicated region fallthrough
CT: control target
= control target key end

     0   :  { %6 = vsyncpa [#allocation3], 0  ;;  %s424_s0 = inlined_call_operand.hbm [shape: f32[32,1024], index: 0, kind: input, shape index: {}]   ;;  %s425_s1 = inlined_call_operand.hbm [shape: f32[32,1024], index: 1, kind: output, shape index: {}]  }
   0x1   :  { %7 = vsyncpa [#allocation4], 0  ;;  %s380_s6 = smov [#allocation2]   ;;  %s332_s10 = scalar_lea.hbm %s424_s0, 4096 }
   0x2   :  { %s13_s7 = sshll.u32 %s380_s6, 4  ;;  %p333_p0 = scmp.ne.s32.totalorder %s424_s0, %s332_s10  ;;  %s14_s7 = int_to_ptr.vmem [resolvable:$true] %s13_s7 }
   0x3   :  { %p336_p1 = scmp.lt.u32.totalorder %s332_s10, %s424_s0 }
   0x5   :  { %p338_p2 = pnand %p336_p1, %p333_p0 }
   0x7   :  { %341 = shalt.err (!%p338_p2)
}
   0x8   :  { %s342_s15 = scalar_lea.vmem %s14_s7, 4096  ;;  %p347_p4 = scmp.lt.s32.totalorder %s14_s7, %s14_s7 }
   0x9   :  { %p343_p3 = scmp.ne.s32.totalorder %s14_s7, %s342_s15  ;;  %p348_p5 = scmp.lt.s32.totalorder %s342_s15, %s342_s15 }
   0xb   :  { %p349_p6 = por %p348_p5, %p347_p4 }
   0xd   :  { %p350_p7 = pnand %p349_p6, %p343_p3 }
   0xf   :  { %353 = shalt.err (!%p350_p7)
}
  0x10   :  { %s381_s16 = smov 1024   ;;  %s382_s17 = smov 64  }
  0x11   :  { %19 = dma.hbm_to_vmem [thread:$0]  %s424_s0, 4096, %s14_s7, [#allocation3], %s381_s16, %s381_s16, %s382_s17  }
  0x12   :  { %376 = dma.done.wait [#allocation3], 4096  }
  0x13   :  { %377 = vsyncadd [#allocation3], 4294963200  ;;  %v23_v0 = vld [vmem:[#allocation2] sm:$0xff]  ;;  %v24_v1 = vld [vmem:[#allocation2 + $0x8] sm:$0xff]  ;;  %s383_s0 = smov [#allocation5]  }
  0x14   :  { %v25_v2 = vld [vmem:[#allocation2 + $0x10] sm:$0xff]  ;;  %v55_v3 = vmul.f32 1.442695, %v23_v0  ;;  %v57_v4 = vmul.f32 1.442695, %v24_v1  ;;  %v26_v6 = vld [vmem:[#allocation2 + $0x18] sm:$0xff] }
  0x15   :  { %v59_v5 = vmul.f32 1.442695, %v25_v2  ;;  %v27_v7 = vld [vmem:[#allocation2 + $0x20] sm:$0xff]  ;;  %v28_v8 = vld [vmem:[#allocation2 + $0x28] sm:$0xff]  ;;  %v61_v9 = vmul.f32 1.442695, %v26_v6 }
  0x16   :  { %268 = vpow2.f32 %v55_v3  ;;  %v63_v10 = vmul.f32 1.442695, %v27_v7  ;;  %v65_v11 = vmul.f32 1.442695, %v28_v8  ;;  %v29_v12 = vld [vmem:[#allocation2 + $0x30] sm:$0xff]  ;;  %v30_v13 = vld [vmem:[#allocation2 + $0x38] sm:$0xff] }
  0x17   :  { %270 = vpow2.f32 %v57_v4  ;;  %v31_v14 = vld [vmem:[#allocation2 + $0x40] sm:$0xff]  ;;  %v67_v15 = vmul.f32 1.442695, %v29_v12  ;;  %v69_v16 = vmul.f32 1.442695, %v30_v13  ;;  %v32_v17 = vld [vmem:[#allocation2 + $0x48] sm:$0xff] }
  0x18   :  { %272 = vpow2.f32 %v59_v5  ;;  %v33_v18 = vld [vmem:[#allocation2 + $0x50] sm:$0xff]  ;;  %v71_v19 = vmul.f32 1.442695, %v31_v14  ;;  %v34_v20 = vld [vmem:[#allocation2 + $0x58] sm:$0xff]  ;;  %v73_v21 = vmul.f32 1.442695, %v32_v17 }
  0x19   :  { %274 = vpow2.f32 %v61_v9  ;;  %v35_v22 = vld [vmem:[#allocation2 + $0x60] sm:$0xff]  ;;  %v75_v23 = vmul.f32 1.442695, %v33_v18  ;;  %v36_v24 = vld [vmem:[#allocation2 + $0x68] sm:$0xff]  ;;  %v77_v25 = vmul.f32 1.442695, %v34_v20 }
  0x1a   :  { %276 = vpow2.f32 %v63_v10  ;;  %v37_v26 = vld [vmem:[#allocation2 + $0x70] sm:$0xff]  ;;  %v79_v27 = vmul.f32 1.442695, %v35_v22  ;;  %v38_v28 = vld [vmem:[#allocation2 + $0x78] sm:$0xff]  ;;  %v81_v29 = vmul.f32 1.442695, %v36_v24 }
  0x1b   :  { %278 = vpow2.f32 %v65_v11  ;;  %v39_v30 = vld [vmem:[#allocation2 + $0x80] sm:$0xff]  ;;  %v83_v32 = vmul.f32 1.442695, %v37_v26  ;;  %v40_v33 = vld [vmem:[#allocation2 + $0x88] sm:$0xff]  ;;  %v85_v36 = vmul.f32 1.442695, %v38_v28 }
  0x1c   :  { %280 = vpow2.f32 %v67_v15  ;;  %v41_v37 = vld [vmem:[#allocation2 + $0x90] sm:$0xff]  ;;  %v87_v40 = vmul.f32 1.442695, %v39_v30  ;;  %v42_v41 = vld [vmem:[#allocation2 + $0x98] sm:$0xff]  ;;  %v89_v45 = vmul.f32 1.442695, %v40_v33 }
  0x1d   :  { %282 = vpow2.f32 %v69_v16  ;;  %v43_v46 = vld [vmem:[#allocation2 + $0xa0] sm:$0xff]  ;;  %v91_v50 = vmul.f32 1.442695, %v41_v37  ;;  %v44_v51 = vld [vmem:[#allocation2 + $0xa8] sm:$0xff]  ;;  %v93_v55 = vmul.f32 1.442695, %v42_v41 }
  0x1e   :  { %284 = vpow2.f32 %v71_v19  ;;  %v45_v56 = vld [vmem:[#allocation2 + $0xb0] sm:$0xff]  ;;  %v95_v60 = vmul.f32 1.442695, %v43_v46  ;;  %v46_v61 = vld [vmem:[#allocation2 + $0xb8] sm:$0xff]  ;;  %v97_v1 = vmul.f32 1.442695, %v44_v51 }
  0x1f   :  { %286 = vpow2.f32 %v73_v21  ;;  %v47_v2 = vld [vmem:[#allocation2 + $0xc0] sm:$0xff]  ;;  %v99_v6 = vmul.f32 1.442695, %v45_v56  ;;  %v48_v7 = vld [vmem:[#allocation2 + $0xc8] sm:$0xff]  ;;  %v101_v11 = vmul.f32 1.442695, %v46_v61 }
  0x20   :  { %v269_v31 = vpop.eup %268  ;;  %288 = vpow2.f32 %v75_v23  ;;  %v49_v12 = vld [vmem:[#allocation2 + $0xd0] sm:$0xff]  ;;  %v103_v16 = vmul.f32 1.442695, %v47_v2  ;;  %v50_v17 = vld [vmem:[#allocation2 + $0xd8] sm:$0xff]  ;;  %v105_v21 = vmul.f32 1.442695, %v48_v7 }
  0x21   :  { %v271_v34 = vpop.eup %270  ;;  %v232_v35 = vadd.f32 -1.0, %v269_v31  ;;  %290 = vpow2.f32 %v77_v25  ;;  %v51_v22 = vld [vmem:[#allocation2 + $0xe0] sm:$0xff]  ;;  %v107_v26 = vmul.f32 1.442695, %v49_v12  ;;  %v109_v31 = vmul.f32 1.442695, %v50_v17 }
  0x22   :  { %v273_v38 = vpop.eup %272  ;;  %v233_v39 = vadd.f32 -1.0, %v271_v34  ;;  %292 = vpow2.f32 %v79_v27  ;;  %v52_v27 = vld [vmem:[#allocation2 + $0xe8] sm:$0xff]  ;;  %v54_v37 = vld [vmem:[#allocation2 + $0xf8] sm:$0xff]  ;;  %s220_s20 = sshll.u32 %s383_s0, 4  ;;  %s221_s20 = int_to_ptr.vmem [resolvable:$true] %s220_s20 }
  0x23   :  { %v275_v42 = vpop.eup %274  ;;  %v151_v43 = vmax.f32 %v232_v35, 0.0  ;;  %v234_v44 = vadd.f32 -1.0, %v273_v38  ;;  %294 = vpow2.f32 %v81_v29  ;;  %v113_v41 = vmul.f32 1.442695, %v52_v27  ;;  %s354_s21 = scalar_lea.vmem %s221_s20, 4096  ;;  %p359_p9 = scmp.lt.s32.totalorder %s221_s20, %s221_s20 }
  0x24   :  { %v277_v47 = vpop.eup %276  ;;  %v152_v48 = vmax.f32 %v233_v39, 0.0  ;;  %v235_v49 = vadd.f32 -1.0, %v275_v42  ;;  %296 = vpow2.f32 %v83_v32  ;;  %v53_v32 = vld [vmem:[#allocation2 + $0xf0] sm:$0xff]  ;;  %p355_p8 = scmp.ne.s32.totalorder %s221_s20, %s354_s21  ;;  %p360_p10 = scmp.lt.s32.totalorder %s354_s21, %s354_s21 }
  0x25   :  { %v279_v52 = vpop.eup %278  ;;  %183 = vst [vmem:[#allocation5] sm:$0xff] %v151_v43  ;;  %v153_v53 = vmax.f32 %v234_v44, 0.0  ;;  %v236_v54 = vadd.f32 -1.0, %v277_v47  ;;  %298 = vpow2.f32 %v85_v36  ;;  %v111_v36 = vmul.f32 1.442695, %v51_v22 }
  0x26   :  { %v281_v57 = vpop.eup %280  ;;  %184 = vst [vmem:[#allocation5 + $0x8] sm:$0xff] %v152_v48  ;;  %v154_v58 = vmax.f32 %v235_v49, 0.0  ;;  %v237_v59 = vadd.f32 -1.0, %v279_v52  ;;  %300 = vpow2.f32 %v87_v40  ;;  %v117_v49 = vmul.f32 1.442695, %v54_v37  ;;  %p361_p11 = por %p360_p10, %p359_p9 }
  0x27   :  { %v283_v62 = vpop.eup %282  ;;  %185 = vst [vmem:[#allocation5 + $0x10] sm:$0xff] %v153_v53  ;;  %v155_v63 = vmax.f32 %v236_v54, 0.0  ;;  %v238_v0 = vadd.f32 -1.0, %v281_v57  ;;  %302 = vpow2.f32 %v89_v45  ;;  %v115_v45 = vmul.f32 1.442695, %v53_v32 }
  0x28   :  { %v285_v3 = vpop.eup %284  ;;  %186 = vst [vmem:[#allocation5 + $0x18] sm:$0xff] %v154_v58  ;;  %v156_v4 = vmax.f32 %v237_v59, 0.0  ;;  %v239_v5 = vadd.f32 -1.0, %v283_v62  ;;  %304 = vpow2.f32 %v91_v50  ;;  %p362_p12 = pnand %p361_p11, %p355_p8 }
  0x29   :  { %v287_v8 = vpop.eup %286  ;;  %187 = vst [vmem:[#allocation5 + $0x20] sm:$0xff] %v155_v63  ;;  %v157_v9 = vmax.f32 %v238_v0, 0.0  ;;  %v240_v10 = vadd.f32 -1.0, %v285_v3  ;;  %306 = vpow2.f32 %v93_v55 }
  0x2a   :  { %v289_v13 = vpop.eup %288  ;;  %188 = vst [vmem:[#allocation5 + $0x28] sm:$0xff] %v156_v4  ;;  %v158_v14 = vmax.f32 %v239_v5, 0.0  ;;  %v241_v15 = vadd.f32 -1.0, %v287_v8  ;;  %308 = vpow2.f32 %v95_v60 }
  0x2b   :  { %v291_v18 = vpop.eup %290  ;;  %189 = vst [vmem:[#allocation5 + $0x30] sm:$0xff] %v157_v9  ;;  %v159_v19 = vmax.f32 %v240_v10, 0.0  ;;  %v242_v20 = vadd.f32 -1.0, %v289_v13  ;;  %310 = vpow2.f32 %v97_v1 }
  0x2c   :  { %v293_v23 = vpop.eup %292  ;;  %190 = vst [vmem:[#allocation5 + $0x38] sm:$0xff] %v158_v14  ;;  %v160_v24 = vmax.f32 %v241_v15, 0.0  ;;  %v243_v25 = vadd.f32 -1.0, %v291_v18  ;;  %312 = vpow2.f32 %v99_v6 }
  0x2d   :  { %v295_v28 = vpop.eup %294  ;;  %191 = vst [vmem:[#allocation5 + $0x40] sm:$0xff] %v159_v19  ;;  %v161_v29 = vmax.f32 %v242_v20, 0.0  ;;  %v244_v30 = vadd.f32 -1.0, %v293_v23  ;;  %314 = vpow2.f32 %v101_v11 }
  0x2e   :  { %v297_v33 = vpop.eup %296  ;;  %192 = vst [vmem:[#allocation5 + $0x48] sm:$0xff] %v160_v24  ;;  %v162_v34 = vmax.f32 %v243_v25, 0.0  ;;  %v245_v35 = vadd.f32 -1.0, %v295_v28  ;;  %316 = vpow2.f32 %v103_v16 }
  0x2f   :  { %v299_v38 = vpop.eup %298  ;;  %193 = vst [vmem:[#allocation5 + $0x50] sm:$0xff] %v161_v29  ;;  %v163_v39 = vmax.f32 %v244_v30, 0.0  ;;  %v246_v40 = vadd.f32 -1.0, %v297_v33  ;;  %318 = vpow2.f32 %v105_v21 }
  0x30   :  { %v301_v42 = vpop.eup %300  ;;  %194 = vst [vmem:[#allocation5 + $0x58] sm:$0xff] %v162_v34  ;;  %v164_v43 = vmax.f32 %v245_v35, 0.0  ;;  %v247_v44 = vadd.f32 -1.0, %v299_v38  ;;  %320 = vpow2.f32 %v107_v26 }
  0x31   :  { %v303_v46 = vpop.eup %302  ;;  %195 = vst [vmem:[#allocation5 + $0x60] sm:$0xff] %v163_v39  ;;  %v165_v47 = vmax.f32 %v246_v40, 0.0  ;;  %v248_v48 = vadd.f32 -1.0, %v301_v42  ;;  %322 = vpow2.f32 %v109_v31 }
  0x32   :  { %v305_v50 = vpop.eup %304  ;;  %196 = vst [vmem:[#allocation5 + $0x68] sm:$0xff] %v164_v43  ;;  %v166_v51 = vmax.f32 %v247_v44, 0.0  ;;  %v249_v52 = vadd.f32 -1.0, %v303_v46  ;;  %324 = vpow2.f32 %v111_v36 }
  0x33   :  { %v307_v53 = vpop.eup %306  ;;  %197 = vst [vmem:[#allocation5 + $0x70] sm:$0xff] %v165_v47  ;;  %v167_v54 = vmax.f32 %v248_v48, 0.0  ;;  %v250_v55 = vadd.f32 -1.0, %v305_v50  ;;  %326 = vpow2.f32 %v113_v41 }
  0x34   :  { %v309_v56 = vpop.eup %308  ;;  %198 = vst [vmem:[#allocation5 + $0x78] sm:$0xff] %v166_v51  ;;  %v168_v57 = vmax.f32 %v249_v52, 0.0  ;;  %v251_v58 = vadd.f32 -1.0, %v307_v53  ;;  %328 = vpow2.f32 %v115_v45 }
  0x35   :  { %v311_v59 = vpop.eup %310  ;;  %199 = vst [vmem:[#allocation5 + $0x80] sm:$0xff] %v167_v54  ;;  %v169_v60 = vmax.f32 %v250_v55, 0.0  ;;  %v252_v61 = vadd.f32 -1.0, %v309_v56  ;;  %330 = vpow2.f32 %v117_v49 }
  0x36   :  { %v313_v62 = vpop.eup %312  ;;  %200 = vst [vmem:[#allocation5 + $0x88] sm:$0xff] %v168_v57  ;;  %v170_v63 = vmax.f32 %v251_v58, 0.0  ;;  %v253_v0 = vadd.f32 -1.0, %v311_v59 }
  0x37   :  { %v315_v1 = vpop.eup %314  ;;  %201 = vst [vmem:[#allocation5 + $0x90] sm:$0xff] %v169_v60  ;;  %v171_v2 = vmax.f32 %v252_v61, 0.0  ;;  %v254_v3 = vadd.f32 -1.0, %v313_v62 }
  0x38   :  { %v317_v4 = vpop.eup %316  ;;  %202 = vst [vmem:[#allocation5 + $0x98] sm:$0xff] %v170_v63  ;;  %v172_v5 = vmax.f32 %v253_v0, 0.0  ;;  %v255_v6 = vadd.f32 -1.0, %v315_v1 }
  0x39   :  { %v319_v7 = vpop.eup %318  ;;  %203 = vst [vmem:[#allocation5 + $0xa0] sm:$0xff] %v171_v2  ;;  %v173_v8 = vmax.f32 %v254_v3, 0.0  ;;  %v256_v9 = vadd.f32 -1.0, %v317_v4 }
  0x3a   :  { %v321_v10 = vpop.eup %320  ;;  %204 = vst [vmem:[#allocation5 + $0xa8] sm:$0xff] %v172_v5  ;;  %v174_v11 = vmax.f32 %v255_v6, 0.0  ;;  %v257_v12 = vadd.f32 -1.0, %v319_v7 }
  0x3b   :  { %v323_v13 = vpop.eup %322  ;;  %205 = vst [vmem:[#allocation5 + $0xb0] sm:$0xff] %v173_v8  ;;  %v175_v14 = vmax.f32 %v256_v9, 0.0  ;;  %v258_v15 = vadd.f32 -1.0, %v321_v10 }
  0x3c   :  { %v325_v16 = vpop.eup %324  ;;  %206 = vst [vmem:[#allocation5 + $0xb8] sm:$0xff] %v174_v11  ;;  %v176_v17 = vmax.f32 %v257_v12, 0.0  ;;  %v259_v18 = vadd.f32 -1.0, %v323_v13 }
  0x3d   :  { %v327_v19 = vpop.eup %326  ;;  %207 = vst [vmem:[#allocation5 + $0xc0] sm:$0xff] %v175_v14  ;;  %v177_v20 = vmax.f32 %v258_v15, 0.0  ;;  %v260_v21 = vadd.f32 -1.0, %v325_v16 }
  0x3e   :  { %v329_v22 = vpop.eup %328  ;;  %208 = vst [vmem:[#allocation5 + $0xc8] sm:$0xff] %v176_v17  ;;  %v178_v23 = vmax.f32 %v259_v18, 0.0  ;;  %v261_v24 = vadd.f32 -1.0, %v327_v19 }
  0x3f   :  { %v331_v25 = vpop.eup %330  ;;  %209 = vst [vmem:[#allocation5 + $0xd0] sm:$0xff] %v177_v20  ;;  %v179_v26 = vmax.f32 %v260_v21, 0.0  ;;  %v262_v27 = vadd.f32 -1.0, %v329_v22 }
  0x40   :  { %210 = vst [vmem:[#allocation5 + $0xd8] sm:$0xff] %v178_v23  ;;  %v180_v28 = vmax.f32 %v261_v24, 0.0  ;;  %v263_v29 = vadd.f32 -1.0, %v331_v25 }
  0x41   :  { %211 = vst [vmem:[#allocation5 + $0xe0] sm:$0xff] %v179_v26  ;;  %v181_v30 = vmax.f32 %v262_v27, 0.0 }
  0x42   :  { %212 = vst [vmem:[#allocation5 + $0xe8] sm:$0xff] %v180_v28  ;;  %v182_v31 = vmax.f32 %v263_v29, 0.0 }
  0x43   :  { %213 = vst [vmem:[#allocation5 + $0xf0] sm:$0xff] %v181_v30 }
  0x44   :  { %214 = vst [vmem:[#allocation5 + $0xf8] sm:$0xff] %v182_v31 }
  0x45   :  { %365 = shalt.err (!%p362_p12)
}
  0x46   :  { %s366_s24 = scalar_lea.hbm %s425_s1, 4096 }
  0x47   :  { %p367_p13 = scmp.ne.s32.totalorder %s425_s1, %s366_s24  ;;  %p370_p0 = scmp.lt.u32.totalorder %s366_s24, %s425_s1 }
  0x49   :  { %p372_p1 = pnand %p370_p0, %p367_p13 }
  0x4b   :  { %375 = shalt.err (!%p372_p1)
}
  0x4c   :  { %226 = dma.vmem_to_hbm [thread:$0]  %s221_s20, 4096, %s425_s1, [#allocation4], %s381_s16, %s381_s16, %s382_s17  }
  0x4d   :  { %378 = dma.done.wait [#allocation4], 4096  }
  0x4e   :  { %379 = vsyncadd [#allocation4], 4294963200 }
  0x4f   :  { %230 = vsyncpa [#allocation3], 1 }
  0x50   :  { %231 = vsyncpa [#allocation4], 1 }

</bundles_post_ra>
